<compile_context>
chip_gen: v7x
topology: tpu7x:2x2x1
jax: 0.10.0
libtpu: 0.0.40
codegen_flags: <defaults>
</compile_context>

<pallas_src>
import jax
import jax.numpy as jnp
from jax.experimental import pallas as pl
from jax.experimental.pallas import tpu as pltpu


LEAKY_SLOPE = 0.01  # torch.nn.LeakyReLU default negative_slope


def _leaky_relu(x):
    # Equivalent to where(x >= 0, x, slope*x) for 0 < slope < 1; mul+max only.
    return jnp.maximum(x, LEAKY_SLOPE * x)


def _round_up(v, m):
    return ((v + m - 1) // m) * m


def _expr_decoder_kernel(x_ref, w1_ref, b1_ref, w2_ref, b2_ref, w3_ref, b3_ref,
                         out_ref):
    """Fused 3-layer MLP: (Linear + LeakyReLU) x2 + Linear.

    x_ref:  (tm, d_model)   row tile in the caller's native dtype
    w*_ref: (in, out)       full weight matrices in the MXU operand dtype
    b*_ref: (1, out)        biases in f32 (broadcast along rows)
    out_ref:(tm, n_bins)    output tile in the caller's native dtype
    """
    compute_dtype = w1_ref.dtype
    # In-kernel cast to the MXU operand dtype (no wrapper-side HBM pass).
    x = x_ref[...].astype(compute_dtype)

    # Layer 1: matmul in compute dtype, f32 accumulate; epilogue in f32.
    h1 = jnp.dot(x, w1_ref[...], preferred_element_type=jnp.float32)
    h1 = _leaky_relu(h1 + b1_ref[...]).astype(compute_dtype)

    # Layer 2.
    h2 = jnp.dot(h1, w2_ref[...], preferred_element_type=jnp.float32)
    h2 = _leaky_relu(h2 + b2_ref[...]).astype(compute_dtype)

    # Layer 3 (no activation).
    h3 = jnp.dot(h2, w3_ref[...], preferred_element_type=jnp.float32)
    out_ref[...] = (h3 + b3_ref[...]).astype(out_ref.dtype)


def expr_decoder_forward(x, params, *, row_tile=2048, compute_dtype=jnp.bfloat16):
    """x: (batch, seq_len, d_model) -> (batch, seq_len, n_bins)."""
    b, s, d_model = x.shape
    n_bins = params["w3"].shape[1]
    n_rows = b * s

    out_dtype = x.dtype
    compute_dtype = jnp.dtype(compute_dtype)

    # ---- parameter prep (done once, outside the kernel) --------------------
    # Weights in the MXU operand dtype; biases kept in f32 for the epilogue.
    w1 = params["w1"].astype(compute_dtype)
    w2 = params["w2"].astype(compute_dtype)
    w3 = params["w3"].astype(compute_dtype)
    b1 = params["b1"].reshape(1, d_model).astype(jnp.float32)
    b2 = params["b2"].reshape(1, d_model).astype(jnp.float32)
    b3 = params["b3"].reshape(1, n_bins).astype(jnp.float32)

    # Activations stay in their native dtype (no extra HBM pass for a cast).
    x2d = x.reshape(n_rows, d_model)

    x_item = jnp.dtype(x.dtype).itemsize
    o_item = jnp.dtype(out_dtype).itemsize
    c_item = compute_dtype.itemsize
    sublane = 8 if x_item >= 4 else 32 // x_item

    # ---- generation-aware VMEM cap ------------------------------------------
    try:
        vmem_cap = int(pltpu.get_tpu_info().vmem_capacity_bytes)
    except Exception:
        vmem_cap = 64 << 20  # conservative: v7x per-TC VMEM
    budget_cap = int(vmem_cap * 0.9)

    # ---- row tiling ----------------------------------------------------------
    if n_rows <= sublane:
        tile0 = n_rows  # single tiny block, full-dim (always legal)
    else:
        tile0 = max(sublane, (int(row_tile) // sublane) * sublane)
        # Keep >= 2 grid steps so ("parallel",) can use both v7x TensorCores.
        tile0 = min(tile0, _round_up(pl.cdiv(n_rows, 2), sublane))

    def _footprint(tile, weight_bufs):
        x_tile = tile * d_model * x_item
        out_tile = tile * n_bins * o_item
        # f32 intermediates + compute-dtype copies of activations (live values)
        act = tile * (2 * d_model * (4 + c_item) + n_bins * 4)
        wts = (2 * d_model * d_model + d_model * n_bins) * c_item
        bias = (2 * d_model + n_bins) * 4
        return 2 * (x_tile + out_tile) + weight_bufs * (wts + bias) + act + (2 << 20)

    flops = 2 * n_rows * d_model * (2 * d_model + n_bins)
    bytes_accessed = (n_rows * d_model * x_item
                      + n_rows * n_bins * o_item
                      + (2 * d_model * d_model + d_model * n_bins) * c_item
                      + (2 * d_model + n_bins) * 4)

    def _run(single_buffer_weights):
        wbufs = 1 if single_buffer_weights else 2
        tile = tile0
        # Shrink the row tile rather than silently under-provisioning VMEM.
        while tile > sublane and _footprint(tile, wbufs) > budget_cap:
            tile = max(sublane, ((tile // 2) // sublane) * sublane)

        need = _footprint(tile, wbufs)
        vmem_bytes = min(max(need, 32 << 20), budget_cap)
        vmem_bytes = int(max(vmem_bytes, need))  # never clamp below the need

        grid = (pl.cdiv(n_rows, tile),)
        wmode = {"pipeline_mode": pl.Buffered(1)} if single_buffer_weights else {}

        return pl.pallas_call(
            _expr_decoder_kernel,
            out_shape=jax.ShapeDtypeStruct((n_rows, n_bins), out_dtype),
            grid_spec=pltpu.PrefetchScalarGridSpec(
                num_scalar_prefetch=0,
                grid=grid,
                in_specs=[
                    pl.BlockSpec((tile, d_model), lambda i: (i, 0)),
                    pl.BlockSpec((d_model, d_model), lambda i: (0, 0), **wmode),
                    pl.BlockSpec((1, d_model), lambda i: (0, 0), **wmode),
                    pl.BlockSpec((d_model, d_model), lambda i: (0, 0), **wmode),
                    pl.BlockSpec((1, d_model), lambda i: (0, 0), **wmode),
                    pl.BlockSpec((d_model, n_bins), lambda i: (0, 0), **wmode),
                    pl.BlockSpec((1, n_bins), lambda i: (0, 0), **wmode),
                ],
                out_specs=pl.BlockSpec((tile, n_bins), lambda i: (i, 0)),
            ),
            compiler_params=pltpu.CompilerParams(
                dimension_semantics=("parallel",),
                vmem_limit_bytes=vmem_bytes,
            ),
            cost_estimate=pl.CostEstimate(
                flops=flops, transcendentals=0, bytes_accessed=bytes_accessed),
        )(x2d, w1, b1, w2, b2, w3, b3)

    try:
        out2d = _run(single_buffer_weights=True)
    except Exception:
        # Fallback for builds that reject Buffered(1) on pallas_call operands:
        # revert to default double-buffered weight blocks.
        out2d = _run(single_buffer_weights=False)

    return out2d.reshape(b, s, n_bins)


def init_expr_decoder_params(key, d_model, n_bins, dtype=jnp.float32):
    """Deterministic synthetic parameters, same shapes as the torch module.

    Stored as (in_features, out_features), i.e. the transpose of torch's
    Linear.weight layout.
    """
    k1, k2, k3, k4, k5, k6 = jax.random.split(key, 6)
    scale1 = 1.0 / jnp.sqrt(d_model)
    return {
        "w1": (jax.random.normal(k1, (d_model, d_model)) * scale1).astype(dtype),
        "b1": (jax.random.normal(k2, (1, d_model)) * 0.01).astype(dtype),
        "w2": (jax.random.normal(k3, (d_model, d_model)) * scale1).astype(dtype),
        "b2": (jax.random.normal(k4, (1, d_model)) * 0.01).astype(dtype),
        "w3": (jax.random.normal(k5, (d_model, n_bins)) * scale1).astype(dtype),
        "b3": (jax.random.normal(k6, (1, n_bins)) * 0.01).astype(dtype),
    }


def _reference_forward(x, params):
    """Pure-JAX (f32) reference of the torch module for sanity checking."""
    h = jnp.einsum("bsd,de->bse", x, params["w1"]) + params["b1"][0]
    h = jnp.where(h >= 0, h, LEAKY_SLOPE * h)
    h = jnp.einsum("bsd,de->bse", h, params["w2"]) + params["b2"][0]
    h = jnp.where(h >= 0, h, LEAKY_SLOPE * h)
    h = jnp.einsum("bsd,de->bse", h, params["w3"]) + params["b3"][0]
    return h


if __name__ == "__main__":
    batch, seq_len, d_model, n_bins = 2, 8, 32, 16

    key = jax.random.PRNGKey(0)
    kx, kp = jax.random.split(key)
    x = jax.random.normal(kx, (batch, seq_len, d_model), dtype=jnp.float32)
    params = init_expr_decoder_params(kp, d_model, n_bins, dtype=jnp.float32)

    ref = _reference_forward(x, params)

    # f32 compute path (exact match to the torch/pure-JAX reference).
    pred = expr_decoder_forward(x, params, compute_dtype=jnp.float32)
    pred = jax.block_until_ready(pred)
    assert pred.shape == (batch, seq_len, n_bins)
    assert jnp.allclose(pred, ref, atol=1e-4, rtol=1e-4)

    # Default path: bf16 MXU operands, f32 accumulate — loose-tolerance check.
    pred_bf16 = expr_decoder_forward(x, params)
    pred_bf16 = jax.block_until_ready(pred_bf16)
    assert pred_bf16.shape == (batch, seq_len, n_bins)
    assert jnp.allclose(pred_bf16.astype(jnp.float32), ref, atol=2e-1, rtol=1e-1)

    print("KERNEL_OK")
</pallas_src>

<mosaic_0001>
module attributes {stable_mosaic.version = 11 : i64} {
  func.func @_expr_decoder_kernel(%arg0: i32, %arg1: memref<8x32xf32, #tpu.memory_space<vmem>>, %arg2: memref<32x32xf32, #tpu.memory_space<vmem>>, %arg3: memref<1x32xf32, #tpu.memory_space<vmem>>, %arg4: memref<32x32xf32, #tpu.memory_space<vmem>>, %arg5: memref<1x32xf32, #tpu.memory_space<vmem>>, %arg6: memref<32x16xf32, #tpu.memory_space<vmem>>, %arg7: memref<1x16xf32, #tpu.memory_space<vmem>>, %arg8: memref<8x16xf32, #tpu.memory_space<vmem>>) attributes {dimension_semantics = [#tpu.dimension_semantics<parallel>], iteration_bounds = array<i64: 2>, scalar_prefetch = 0 : i64, scratch_operands = 0 : i64, tpu.core_type = #tpu.core_type<tc>, window_params = [{transform_indices = @transform_0, window_bounds = array<i64: 8, 32>}, {pipeline_mode = #tpu.pipeline_mode<synchronous>, transform_indices = @transform_1, window_bounds = array<i64: 32, 32>}, {pipeline_mode = #tpu.pipeline_mode<synchronous>, transform_indices = @transform_2, window_bounds = array<i64: 1, 32>}, {pipeline_mode = #tpu.pipeline_mode<synchronous>, transform_indices = @transform_3, window_bounds = array<i64: 32, 32>}, {pipeline_mode = #tpu.pipeline_mode<synchronous>, transform_indices = @transform_4, window_bounds = array<i64: 1, 32>}, {pipeline_mode = #tpu.pipeline_mode<synchronous>, transform_indices = @transform_5, window_bounds = array<i64: 32, 16>}, {pipeline_mode = #tpu.pipeline_mode<synchronous>, transform_indices = @transform_6, window_bounds = array<i64: 1, 16>}, {transform_indices = @transform_7, window_bounds = array<i64: 8, 16>}]} {
    %c0 = arith.constant 0 : index
    %c0_0 = arith.constant 0 : index
    %0 = vector.load %arg1[%c0, %c0_0] : memref<8x32xf32, #tpu.memory_space<vmem>>, vector<8x32xf32>
    %c0_1 = arith.constant 0 : index
    %c0_2 = arith.constant 0 : index
    %1 = vector.load %arg2[%c0_1, %c0_2] : memref<32x32xf32, #tpu.memory_space<vmem>>, vector<32x32xf32>
    %cst = arith.constant dense<0.000000e+00> : vector<8x32xf32>
    %2 = tpu.matmul %0, %1, %cst {dimension_numbers = #tpu.dot_dimension_numbers<[1], [0], [0], [1], [0, 0, 1, 1], [], []>} : vector<8x32xf32>, vector<32x32xf32>, vector<8x32xf32> -> vector<8x32xf32>
    %c0_3 = arith.constant 0 : index
    %c0_4 = arith.constant 0 : index
    %3 = vector.load %arg3[%c0_3, %c0_4] : memref<1x32xf32, #tpu.memory_space<vmem>>, vector<1x32xf32>
    %4 = vector.broadcast %3 : vector<1x32xf32> to vector<8x32xf32>
    %5 = arith.addf %2, %4 : vector<8x32xf32>
    %cst_5 = arith.constant 0.00999999977 : f32
    %6 = vector.broadcast %cst_5 : f32 to vector<8x32xf32>
    %7 = arith.mulf %6, %5 : vector<8x32xf32>
    %8 = arith.maximumf %5, %7 : vector<8x32xf32>
    %c0_6 = arith.constant 0 : index
    %c0_7 = arith.constant 0 : index
    %9 = vector.load %arg4[%c0_6, %c0_7] : memref<32x32xf32, #tpu.memory_space<vmem>>, vector<32x32xf32>
    %cst_8 = arith.constant dense<0.000000e+00> : vector<8x32xf32>
    %10 = tpu.matmul %8, %9, %cst_8 {dimension_numbers = #tpu.dot_dimension_numbers<[1], [0], [0], [1], [0, 0, 1, 1], [], []>} : vector<8x32xf32>, vector<32x32xf32>, vector<8x32xf32> -> vector<8x32xf32>
    %c0_9 = arith.constant 0 : index
    %c0_10 = arith.constant 0 : index
    %11 = vector.load %arg5[%c0_9, %c0_10] : memref<1x32xf32, #tpu.memory_space<vmem>>, vector<1x32xf32>
    %12 = vector.broadcast %11 : vector<1x32xf32> to vector<8x32xf32>
    %13 = arith.addf %10, %12 : vector<8x32xf32>
    %cst_11 = arith.constant 0.00999999977 : f32
    %14 = vector.broadcast %cst_11 : f32 to vector<8x32xf32>
    %15 = arith.mulf %14, %13 : vector<8x32xf32>
    %16 = arith.maximumf %13, %15 : vector<8x32xf32>
    %c0_12 = arith.constant 0 : index
    %c0_13 = arith.constant 0 : index
    %17 = vector.load %arg6[%c0_12, %c0_13] : memref<32x16xf32, #tpu.memory_space<vmem>>, vector<32x16xf32>
    %cst_14 = arith.constant dense<0.000000e+00> : vector<8x16xf32>
    %18 = tpu.matmul %16, %17, %cst_14 {dimension_numbers = #tpu.dot_dimension_numbers<[1], [0], [0], [1], [0, 0, 1, 1], [], []>} : vector<8x32xf32>, vector<32x16xf32>, vector<8x16xf32> -> vector<8x16xf32>
    %c0_15 = arith.constant 0 : index
    %c0_16 = arith.constant 0 : index
    %19 = vector.load %arg7[%c0_15, %c0_16] : memref<1x16xf32, #tpu.memory_space<vmem>>, vector<1x16xf32>
    %20 = vector.broadcast %19 : vector<1x16xf32> to vector<8x16xf32>
    %21 = arith.addf %18, %20 : vector<8x16xf32>
    %c0_17 = arith.constant 0 : index
    %c0_18 = arith.constant 0 : index
    %22 = vector.load %arg8[%c0_17, %c0_18] : memref<8x16xf32, #tpu.memory_space<vmem>>, vector<8x16xf32>
    tpu.vector_store %arg8[%c0_17, %c0_18], %21 {strides = array<i32>} : memref<8x16xf32, #tpu.memory_space<vmem>>, vector<8x16xf32>,
    return
  }
  func.func @transform_0(%arg0: i32) -> (i32, i32) {
    %c0_i32 = arith.constant 0 : i32
    %c0_i32_0 = arith.constant 0 : i32
    return %arg0, %c0_i32 : i32, i32
  }
  func.func @transform_1(%arg0: i32) -> (i32, i32) {
    %c0_i32 = arith.constant 0 : i32
    %c0_i32_0 = arith.constant 0 : i32
    %c0_i32_1 = arith.constant 0 : i32
    return %c0_i32, %c0_i32_0 : i32, i32
  }
  func.func @transform_2(%arg0: i32) -> (i32, i32) {
    %c0_i32 = arith.constant 0 : i32
    %c0_i32_0 = arith.constant 0 : i32
    %c0_i32_1 = arith.constant 0 : i32
    return %c0_i32, %c0_i32_0 : i32, i32
  }
  func.func @transform_3(%arg0: i32) -> (i32, i32) {
    %c0_i32 = arith.constant 0 : i32
    %c0_i32_0 = arith.constant 0 : i32
    %c0_i32_1 = arith.constant 0 : i32
    return %c0_i32, %c0_i32_0 : i32, i32
  }
  func.func @transform_4(%arg0: i32) -> (i32, i32) {
    %c0_i32 = arith.constant 0 : i32
    %c0_i32_0 = arith.constant 0 : i32
    %c0_i32_1 = arith.constant 0 : i32
    return %c0_i32, %c0_i32_0 : i32, i32
  }
  func.func @transform_5(%arg0: i32) -> (i32, i32) {
    %c0_i32 = arith.constant 0 : i32
    %c0_i32_0 = arith.constant 0 : i32
    %c0_i32_1 = arith.constant 0 : i32
    return %c0_i32, %c0_i32_0 : i32, i32
  }
  func.func @transform_6(%arg0: i32) -> (i32, i32) {
    %c0_i32 = arith.constant 0 : i32
    %c0_i32_0 = arith.constant 0 : i32
    %c0_i32_1 = arith.constant 0 : i32
    return %c0_i32, %c0_i32_0 : i32, i32
  }
  func.func @transform_7(%arg0: i32) -> (i32, i32) {
    %c0_i32 = arith.constant 0 : i32
    %c0_i32_0 = arith.constant 0 : i32
    return %arg0, %c0_i32 : i32, i32
  }
}

module attributes {stable_mosaic.version = 11 : i64} {
  func.func @_expr_decoder_kernel(%arg0: i32, %arg1: memref<8x32xf32, #tpu.memory_space<vmem>>, %arg2: memref<32x32xf32, #tpu.memory_space<vmem>>, %arg3: memref<1x32xf32, #tpu.memory_space<vmem>>, %arg4: memref<32x32xf32, #tpu.memory_space<vmem>>, %arg5: memref<1x32xf32, #tpu.memory_space<vmem>>, %arg6: memref<32x16xf32, #tpu.memory_space<vmem>>, %arg7: memref<1x16xf32, #tpu.memory_space<vmem>>, %arg8: memref<8x16xf32, #tpu.memory_space<vmem>>) attributes {dimension_semantics = [#tpu.dimension_semantics<parallel>], iteration_bounds = array<i64: 2>, scalar_prefetch = 0 : i64, scratch_operands = 0 : i64, tpu.core_type = #tpu.core_type<tc>, window_params = [{transform_indices = @transform_0, window_bounds = array<i64: 8, 32>}, {pipeline_mode = #tpu.pipeline_mode<synchronous>, transform_indices = @transform_1, window_bounds = array<i64: 32, 32>}, {pipeline_mode = #tpu.pipeline_mode<synchronous>, transform_indices = @transform_2, window_bounds = array<i64: 1, 32>}, {pipeline_mode = #tpu.pipeline_mode<synchronous>, transform_indices = @transform_3, window_bounds = array<i64: 32, 32>}, {pipeline_mode = #tpu.pipeline_mode<synchronous>, transform_indices = @transform_4, window_bounds = array<i64: 1, 32>}, {pipeline_mode = #tpu.pipeline_mode<synchronous>, transform_indices = @transform_5, window_bounds = array<i64: 32, 16>}, {pipeline_mode = #tpu.pipeline_mode<synchronous>, transform_indices = @transform_6, window_bounds = array<i64: 1, 16>}, {transform_indices = @transform_7, window_bounds = array<i64: 8, 16>}]} {
    %c0 = arith.constant 0 : index
    %c0_0 = arith.constant 0 : index
    %0 = vector.load %arg1[%c0, %c0_0] : memref<8x32xf32, #tpu.memory_space<vmem>>, vector<8x32xf32>
    %c0_1 = arith.constant 0 : index
    %c0_2 = arith.constant 0 : index
    %1 = vector.load %arg2[%c0_1, %c0_2] : memref<32x32xf32, #tpu.memory_space<vmem>>, vector<32x32xf32>
    %cst = arith.constant dense<0.000000e+00> : vector<8x32xf32>
    %2 = tpu.matmul %0, %1, %cst {dimension_numbers = #tpu.dot_dimension_numbers<[1], [0], [0], [1], [0, 0, 1, 1], [], []>} : vector<8x32xf32>, vector<32x32xf32>, vector<8x32xf32> -> vector<8x32xf32>
    %c0_3 = arith.constant 0 : index
    %c0_4 = arith.constant 0 : index
    %3 = vector.load %arg3[%c0_3, %c0_4] : memref<1x32xf32, #tpu.memory_space<vmem>>, vector<1x32xf32>
    %4 = vector.broadcast %3 : vector<1x32xf32> to vector<8x32xf32>
    %5 = arith.addf %2, %4 : vector<8x32xf32>
    %cst_5 = arith.constant 0.00999999977 : f32
    %6 = vector.broadcast %cst_5 : f32 to vector<8x32xf32>
    %7 = arith.mulf %6, %5 : vector<8x32xf32>
    %8 = arith.maximumf %5, %7 : vector<8x32xf32>
    %c0_6 = arith.constant 0 : index
    %c0_7 = arith.constant 0 : index
    %9 = vector.load %arg4[%c0_6, %c0_7] : memref<32x32xf32, #tpu.memory_space<vmem>>, vector<32x32xf32>
    %cst_8 = arith.constant dense<0.000000e+00> : vector<8x32xf32>
    %10 = tpu.matmul %8, %9, %cst_8 {dimension_numbers = #tpu.dot_dimension_numbers<[1], [0], [0], [1], [0, 0, 1, 1], [], []>} : vector<8x32xf32>, vector<32x32xf32>, vector<8x32xf32> -> vector<8x32xf32>
    %c0_9 = arith.constant 0 : index
    %c0_10 = arith.constant 0 : index
    %11 = vector.load %arg5[%c0_9, %c0_10] : memref<1x32xf32, #tpu.memory_space<vmem>>, vector<1x32xf32>
    %12 = vector.broadcast %11 : vector<1x32xf32> to vector<8x32xf32>
    %13 = arith.addf %10, %12 : vector<8x32xf32>
    %cst_11 = arith.constant 0.00999999977 : f32
    %14 = vector.broadcast %cst_11 : f32 to vector<8x32xf32>
    %15 = arith.mulf %14, %13 : vector<8x32xf32>
    %16 = arith.maximumf %13, %15 : vector<8x32xf32>
    %c0_12 = arith.constant 0 : index
    %c0_13 = arith.constant 0 : index
    %17 = vector.load %arg6[%c0_12, %c0_13] : memref<32x16xf32, #tpu.memory_space<vmem>>, vector<32x16xf32>
    %cst_14 = arith.constant dense<0.000000e+00> : vector<8x16xf32>
    %18 = tpu.matmul %16, %17, %cst_14 {dimension_numbers = #tpu.dot_dimension_numbers<[1], [0], [0], [1], [0, 0, 1, 1], [], []>} : vector<8x32xf32>, vector<32x16xf32>, vector<8x16xf32> -> vector<8x16xf32>
    %c0_15 = arith.constant 0 : index
    %c0_16 = arith.constant 0 : index
    %19 = vector.load %arg7[%c0_15, %c0_16] : memref<1x16xf32, #tpu.memory_space<vmem>>, vector<1x16xf32>
    %20 = vector.broadcast %19 : vector<1x16xf32> to vector<8x16xf32>
    %21 = arith.addf %18, %20 : vector<8x16xf32>
    %c0_17 = arith.constant 0 : index
    %c0_18 = arith.constant 0 : index
    %22 = vector.load %arg8[%c0_17, %c0_18] : memref<8x16xf32, #tpu.memory_space<vmem>>, vector<8x16xf32>
    tpu.vector_store %arg8[%c0_17, %c0_18], %21 {strides = array<i32>} : memref<8x16xf32, #tpu.memory_space<vmem>>, vector<8x16xf32>,
    return
  }
  func.func @transform_0(%arg0: i32) -> (i32, i32) {
    %c0_i32 = arith.constant 0 : i32
    %c0_i32_0 = arith.constant 0 : i32
    return %arg0, %c0_i32 : i32, i32
  }
  func.func @transform_1(%arg0: i32) -> (i32, i32) {
    %c0_i32 = arith.constant 0 : i32
    %c0_i32_0 = arith.constant 0 : i32
    %c0_i32_1 = arith.constant 0 : i32
    return %c0_i32, %c0_i32_0 : i32, i32
  }
  func.func @transform_2(%arg0: i32) -> (i32, i32) {
    %c0_i32 = arith.constant 0 : i32
    %c0_i32_0 = arith.constant 0 : i32
    %c0_i32_1 = arith.constant 0 : i32
    return %c0_i32, %c0_i32_0 : i32, i32
  }
  func.func @transform_3(%arg0: i32) -> (i32, i32) {
    %c0_i32 = arith.constant 0 : i32
    %c0_i32_0 = arith.constant 0 : i32
    %c0_i32_1 = arith.constant 0 : i32
    return %c0_i32, %c0_i32_0 : i32, i32
  }
  func.func @transform_4(%arg0: i32) -> (i32, i32) {
    %c0_i32 = arith.constant 0 : i32
    %c0_i32_0 = arith.constant 0 : i32
    %c0_i32_1 = arith.constant 0 : i32
    return %c0_i32, %c0_i32_0 : i32, i32
  }
  func.func @transform_5(%arg0: i32) -> (i32, i32) {
    %c0_i32 = arith.constant 0 : i32
    %c0_i32_0 = arith.constant 0 : i32
    %c0_i32_1 = arith.constant 0 : i32
    return %c0_i32, %c0_i32_0 : i32, i32
  }
  func.func @transform_6(%arg0: i32) -> (i32, i32) {
    %c0_i32 = arith.constant 0 : i32
    %c0_i32_0 = arith.constant 0 : i32
    %c0_i32_1 = arith.constant 0 : i32
    return %c0_i32, %c0_i32_0 : i32, i32
  }
  func.func @transform_7(%arg0: i32) -> (i32, i32) {
    %c0_i32 = arith.constant 0 : i32
    %c0_i32_0 = arith.constant 0 : i32
    return %arg0, %c0_i32 : i32, i32
  }
}

</mosaic_0001>

<bundles_post_ra>
// kernel: tpu_custom_call.1
= control target key start
LH: loop header
LB: loop body
LE: loop exit
PB: predicated region body
PF: predicated region fallthrough
CT: control target
= control target key end

     0   :  { %12 = vsyncpa [#allocation3], 0  ;;  %s1090_s0 = inlined_call_operand.vmem [shape: f32[16,32], index: 0, kind: input, shape index: {}]   ;;  %s1091_s1 = inlined_call_operand.vmem [shape: f32[32,32], index: 1, kind: input, shape index: {}]   ;;  %s1092_s2 = inlined_call_operand.vmem [shape: f32[1,32], index: 2, kind: input, shape index: {}]   ;;  %s1093_s3 = inlined_call_operand.hbm [shape: f32[32,32], index: 3, kind: input, shape index: {}]   ;;  %s1094_s4 = inlined_call_operand.vmem [shape: f32[1,32], index: 4, kind: input, shape index: {}]   ;;  %s1095_s5 = inlined_call_operand.vmem [shape: f32[32,16], index: 5, kind: input, shape index: {}]   ;;  %s1096_s6 = inlined_call_operand.vmem [shape: f32[1,16], index: 6, kind: input, shape index: {}]   ;;  %s1097_s7 = inlined_call_operand.hbm [shape: f32[16,16], index: 7, kind: output, shape index: {}]  }
   0x1   :  { %13 = vsyncpa [#allocation4], 0 }
   0x2   :  { %15 = vsyncpa [#allocation4 + $0x1], 0  ;;  %s916_s24 = smov 0   ;;  %s918_s25 = smov 0  }
   0x3   :  { %s920_s26 = smov 0   ;;  %s922_s27 = smov 0  }
   0x4 LB: > { %s937_s28 = sadd.s32 4294967295, %s867_s27   ;;  %s634_s29 = sadd.s32 4294967294, %s867_s27   ;;  %s867_s27 = sphi %s922_s27, %s1113_s27   ;;  %s863_s26 = sphi %s920_s26, %s1112_s26   ;;  %s859_s25 = sphi %s918_s25, %s1111_s25   ;;  %s855_s24 = sphi %s916_s24, %s1110_s24  }
   0x5   : > { %s941_s30 = sadd.s32 1, %s867_s27   ;;  %s180_s8 = sadd.s32 1, %s863_s26 }
   0x6   : > { %s177_s9 = ssub.s32 %s867_s27, %s941_s30  ;;  %p190_p0 = scmp.ne.s32.totalorder %s863_s26, %s859_s25 }
   0x7   : > { %p178_p1 = scmp.eq.s32.totalorder %s177_s9, 0  ;;  %p191_p2 = scmp.eq.s32.totalorder %s937_s28, 1 }
   0x8   : > { %p196_p3 = scmp.ne.s32.totalorder %s859_s25, %s855_s24  ;;  %p197_p4 = scmp.eq.s32.totalorder %s634_s29, 1 }
   0x9   : > { %s952_s10 = scalar_select %p178_p1, %s863_s26, %s180_s8  }
   0xa   : > { %p954_p5 = por %p191_p2, %p190_p0  ;;  %p958_p6 = por %p197_p4, %p196_p3 }
   0xb   : > { %p635_p7 = scmp.ge.s32.totalorder %s867_s27, 1  ;;  %p204_p8 = scmp.lt.s32.totalorder %s867_s27, 3 }
   0xc   : > { %s1101_s11 = scalar_select %p954_p5, 1, 0 }
   0xd   : > { %s1102_s12 = scalar_select %p958_p6, 1, 0 }
   0xe   : > { %p1098_p9 = scmp.eq.s32.totalorder %s937_s28, 0  ;;  %p965_p10 = pnand %p635_p7, %p204_p8 }
   0xf   : > { %s869_s14 = smov [#allocation2]   ;;  %s773_s19 = scalar_lea.hbm %s1093_s3, 512 }
  0x10   : > { %s1103_s13 = scalar_select %p965_p10, 1, 0 }
  0x11   : > { %s222_s15 = sshll.u32 %s869_s14, 4  ;;  %p724_p11 = pneg %p965_p10  ;;  %s223_s15 = int_to_ptr.vmem [resolvable:$true] %s222_s15 }
  0x12   : > { %p774_p13 = scmp.ne.s32.totalorder %s1093_s3, %s773_s19  ;;  %p780_p3 = scmp.lt.u32.totalorder %s773_s19, %s1093_s3 }
  0x13   : > { %p973_p12 = pnand %p1098_p9, %p724_p11 }
  0x15   : > { %p775_p0 = pneg %p973_p12 }
  0x17   : > { %p776_p1 = pnand %p775_p0, %p774_p13 }
  0x19   : > { %p777_p2 = pneg %p776_p1 }
  0x1b   : > { %p782_p4 = pnand %p780_p3, %p777_p2 }
  0x1d   : > { %785 = shalt.err (!%p782_p4)
}
  0x1e   : > { %s786_s29 = scalar_lea.vmem %s223_s15, 512  ;;  %p794_p9 = scmp.lt.s32.totalorder %s223_s15, %s223_s15 }
  0x1f   : > { %p787_p7 = scmp.ne.s32.totalorder %s223_s15, %s786_s29  ;;  %p795_p6 = scmp.lt.s32.totalorder %s786_s29, %s786_s29 }
  0x21   : > { %p789_p8 = pnand %p787_p7, %p775_p0  ;;  %p796_p5 = por %p795_p6, %p794_p9 }
  0x23   : > { %p790_p11 = pneg %p789_p8 }
  0x25   : > { %p797_p10 = pnand %p796_p5, %p790_p11 }
  0x27   : > { %800 = shalt.err (!%p797_p10)
}
  0x28   : > { %s870_s8 = smov 128   ;;  %s871_s9 = smov 8  }
  0x29   : > { %727 = dma.hbm_to_vmem [thread:$0]  (!%p973_p12), %s1093_s3, 512, %s223_s15, [#allocation3], %s870_s8, %s870_s8, %s871_s9  }
  0x2a   : > { %p1105_p13 = scmp.ne.s32.totalorder %s1103_s13, 0 }
  0x2b   : > { %p1106_p1 = scmp.eq.s32.totalorder (!%p1105_p13), %s937_s28, 0 }
  0x2c   : > { %254 = sbr.rel (%p1105_p13) target bundleno = 726 (0x2d6), region = 48 }
  0x33   : > { %846 = dma.done.wait (%p1106_p1), [#allocation3], 512   ;;  %p1107_p0 = pmov %p1106_p1 }
  0x34   : > { %p285_p5 = scmp.lt.s32.totalorder %s937_s28, 1  ;;  %v872_v0 = vmov 0.0|0.0   ;;  %vm873_vm0 = vmmov 0   ;;  %v874_v1 = vmov 0.0   ;;  %v290_v2 = vld [vmem:[%s1091_s1] sm:$0xff]  ;;  %v291_v3 = vld [vmem:[%s1091_s1 + $0x8] sm:$0xff] }
  0x35   : > { %848 = vsyncadd (%p1107_p0), [#allocation3], 4294966784  ;;  %700 = vmatprep.subr.bf16.mxu0 %v872_v0  ;;  %675 = vmatprep.mubr.msk.f32.mxu0 %vm873_vm0, %v874_v1  ;;  %v292_v4 = vld [vmem:[%s1091_s1 + $0x10] sm:$0xff]  ;;  %v701_v5 = vpack.c.bf16 %v291_v3, %v290_v2  ;;  %v293_v6 = vld [vmem:[%s1091_s1 + $0x18] sm:$0xff]  ;;  %vm301_vm1 = vcmask 261120   ;;  %s282_s9 = sand.u32 1, %s859_s25  }
  0x36   : > { %706 = vmatprep.subr.bf16.mxu1 %v872_v0  ;;  %686 = vmatprep.mubr.msk.f32.mxu1 %vm873_vm0, %v874_v1  ;;  %s286_s13 = scalar_select %p285_p5, %s937_s28, 1  ;;  %v704_v7 = vpack.c.bf16 %v293_v6, %v292_v4  ;;  %v377_v9 = vld [vmem:[#allocation2] sm:$0xff]  ;;  %v378_v10 = vld [vmem:[#allocation2 + $0x8] sm:$0xff]  ;;  %v379_v12 = vld [vmem:[#allocation2 + $0x10] sm:$0xff]  ;;  %vm547_vm2 = vcmask 130048  }
  0x37   : > { %702 = vmatpush3.bf16.msra.mxu0 %v701_v5  ;;  %v707_v11 = vpack.c.bf16 %v378_v10, %v377_v9  ;;  %v380_v13 = vld [vmem:[#allocation2 + $0x18] sm:$0xff]  ;;  %v642_v15 = vld [vmem:[%s1092_s2] ss:$0 sm:$0xff]  ;;  %v464_v22 = vld [vmem:[%s1095_s5 + $0x8] sm:$0xff]  ;;  %s649_s15 = sshll.u32 %s937_s28, 7  ;;  %s550_s22 = scalar_lea.sflag [#allocation4], %s282_s9 }
  0x38   : > { %s641_s29 = sshll.u32 %s286_s13, 3  ;;  %703 = vmatprep.subr.bf16.mxu0 %v872_v0  ;;  %v710_v14 = vpack.c.bf16 %v380_v13, %v379_v12  ;;  %v463_v21 = vld [vmem:[%s1095_s5] sm:$0xff]  ;;  %v465_v24 = vld [vmem:[%s1095_s5 + $0x10] sm:$0xff]  ;;  %v466_v25 = vld [vmem:[%s1095_s5 + $0x18] sm:$0xff]  ;;  %s1048_s21 = scalar_lea.hbm %s1097_s7, %s649_s15 }
  0x39   : > { %s288_s14 = scalar_lea.vmem %s1090_s0, %s641_s29  ;;  %708 = vmatpush3.bf16.msra.mxu1 %v707_v11  ;;  %v713_v23 = vpack.c.bf16 %v464_v22, %v463_v21  ;;  %v716_v26 = vpack.c.bf16 %v466_v25, %v465_v24  ;;  %v644_v27 = vld [vmem:[%s1094_s4] ss:$0 sm:$0xff]  ;;  %p1108_p9 = scmp.ne.s32.totalorder %s1101_s11, 0 }
  0x3a   : > { %v289_v8 = vld [vmem:[%s288_s14] sm:$0xff]  ;;  %709 = vmatprep.subr.bf16.mxu1 %v872_v0  ;;  %s640_s14 = sshll.u32 %s282_s9, 3  ;;  %s875_s28 = smov [#allocation5]  }
  0x3b   : > { %705 = vmatpush3.bf16.msra.mxu0 %v704_v7  ;;  %v646_v33 = vld [vmem:[%s1096_s6] ss:$0 sm:$0xff]  ;;  %s284_s16 = scalar_lea.vmem [#allocation5], %s640_s14  ;;  %s805_s29 = sshll.u32 %s875_s28, 4  ;;  %s806_s29 = int_to_ptr.vmem [resolvable:$false] %s805_s29 }
  0x3c   : > { %712 = vmatprep.subr.bf16.mxu0 %v872_v0  ;;  %s563_s18 = sshll.u32 %s284_s16, 4  ;;  %s807_s8 = scalar_lea.vmem %s806_s29, 256  ;;  %s1050_s18 = int_to_ptr.vmem [resolvable:$true] %s563_s18 }
  0x3d   : > { %711 = vmatpush3.bf16.msra.mxu1 %v710_v14  ;;  %s801_s23 = scalar_lea.vmem %s1050_s18, 128  ;;  %p808_p2 = scmp.lt.s32.totalorder %s1050_s18, %s806_s29 }
  0x3e   : > { %676 = vmatmul.mubr.msk.f32.vlgmr.msra.gmra.mrb[0].mxu0 %vm301_vm1, %v289_v8  ;;  %p802_p6 = scmp.ne.s32.totalorder %s1050_s18, %s801_s23  ;;  %p809_p3 = scmp.lt.s32.totalorder %s807_s8, %s801_s23 }
  0x3f   : > { %697 = vmatprep.mubr.msk.f32.mxu0 %vm873_vm0, %v874_v1  ;;  %714 = vmatpush3.bf16.msra.mxu0 %v713_v23 }
  0x40   : > { %715 = vmatprep.subr.bf16.mxu0 %v872_v0  ;;  %p803_p10 = pnand %p802_p6, %p1108_p9  ;;  %p810_p4 = por %p809_p3, %p808_p2 }
  0x42   : > { %p804_p12 = pneg %p803_p10 }
  0x43   : > { %717 = vmatpush3.bf16.msra.mxu0 %v716_v26 }
  0x44   : > { %p811_p7 = pnand %p810_p4, %p804_p12 }
 0x111   : > { %v371_v16 = vpop.f32.mrb[0].mxu0 }
 0x112   : > { %v372_v17 = vadd.f32 %v642_v15, %v371_v16  ;;  %v677_v18 = vpop.f32.mrb[1].mxu0 }
 0x114   : > { %v375_v19 = vmul.f32 0.01, %v372_v17 }
 0x116   : > { %v376_v20 = vmax.f32 %v372_v17, %v375_v19 }
 0x118   : > { %687 = vmatmul.mubr.msk.f32.vlgmr.msra.gmra.mrb[0].mxu1 %vm301_vm1, %v376_v20 }
 0x1eb   : > { %v457_v28 = vpop.f32.mrb[0].mxu1 }
 0x1ec   : > { %v458_v29 = vadd.f32 %v644_v27, %v457_v28  ;;  %v688_v30 = vpop.f32.mrb[1].mxu1 }
 0x1ee   : > { %v461_v31 = vmul.f32 0.01, %v458_v29 }
 0x1f0   : > { %v462_v32 = vmax.f32 %v458_v29, %v461_v31 }
 0x1f2   : > { %698 = vmatmul.mubr.msk.f32.vlgmr.msra.gmra.mrb[2].mxu0 %vm301_vm1, %v462_v32 }
 0x2c5   : > { %v543_v34 = vpop.f32.mrb[2].mxu0 }
 0x2c6   : > { %v544_v35 = vadd.f32 %v646_v33, %v543_v34  ;;  %v699_v36 = vpop.f32.mrb[3].mxu0 }
 0x2c8   : > { %548 = vst.msk [vmem:[%s284_s16] sm:$0xff] %vm547_vm2, %v544_v35 }
 0x2c9   : > { %814 = shalt.err (!%p811_p7)
}
 0x2ca   : > { %s815_s9 = scalar_lea.hbm %s1048_s21, 128  ;;  %s819_s13 = scalar_lea.hbm %s1097_s7, 256 }
 0x2cb   : > { %p816_p8 = scmp.ne.s32.totalorder %s1048_s21, %s815_s9  ;;  %p820_p1 = scmp.lt.u32.totalorder %s1048_s21, %s1097_s7 }
 0x2cc   : > { %p821_p0 = scmp.lt.u32.totalorder %s819_s13, %s815_s9  ;;  %p823_p6 = scmp.lt.u32.totalorder %s815_s9, %s1048_s21 }
 0x2cd   : > { %p817_p11 = pnand %p816_p8, %p1108_p9 }
 0x2ce   : > { %p822_p5 = por %p821_p0, %p820_p1 }
 0x2cf   : > { %p818_p13 = pneg %p817_p11 }
 0x2d0   : > { %p824_p10 = por %p823_p6, %p822_p5 }
 0x2d2   : > { %p825_p12 = pnand %p824_p10, %p818_p13 }
 0x2d4   : > { %828 = shalt.err (!%p825_p12)
}
 0x2d5   : > { %722 = dma.vmem_to_hbm [thread:$0]  (%p1108_p9), %s1050_s18, 128, %s1048_s21, %s550_s22  }
 0x2d6 PF: > { %p734_p2 = scmp.ge.s32.totalorder %s867_s27, 2  ;;  %s575_s19 = sand.u32 1, %s855_s24  }
 0x2d7   : > { %p1109_p3 = scmp.ne.s32.totalorder %s1102_s12, 0  ;;  %s576_s20 = scalar_lea.sflag [#allocation4], %s575_s19 }
 0x2d9   : > { %p729_p4 = pnand %p734_p2, %p1109_p3 }
 0x2db   : > { %850 = dma.done.wait (!%p729_p4), %s576_s20, 128  }
 0x2dc   : > { %852 = vsyncadd (!%p729_p4), %s576_s20, 4294967168  ;;  %p18_p7 = scmp.ge.s32.totalorder %s941_s30, 4   ;;  %s1110_s24 = smov %s859_s25 }
 0x2dd   : > { %s1111_s25 = smov %s863_s26  ;;  %s1112_s26 = smov %s952_s10 }
 0x2de   : > { %s1113_s27 = smov %s941_s30  ;;  %20 = sbr.rel (!%p18_p7) target bundleno = 4 (0x4), region = 88 }
 0x2e5   :  { %581 = vsyncpa [#allocation3], 1 }
 0x2e6   :  { %583 = vsyncpa [#allocation3 + $0x1], 1 }
 0x2e7   :  { %584 = vsyncpa [#allocation4], 1 }
 0x2e8   :  { %586 = vsyncpa [#allocation4 + $0x1], 1 }

// kernel: tpu_custom_call.1
= control target key start
LH: loop header
LB: loop body
LE: loop exit
PB: predicated region body
PF: predicated region fallthrough
CT: control target
= control target key end

     0   :  { %12 = vsyncpa [#allocation3], 0  ;;  %s1090_s0 = inlined_call_operand.vmem [shape: f32[16,32], index: 0, kind: input, shape index: {}]   ;;  %s1091_s1 = inlined_call_operand.vmem [shape: f32[32,32], index: 1, kind: input, shape index: {}]   ;;  %s1092_s2 = inlined_call_operand.vmem [shape: f32[1,32], index: 2, kind: input, shape index: {}]   ;;  %s1093_s3 = inlined_call_operand.hbm [shape: f32[32,32], index: 3, kind: input, shape index: {}]   ;;  %s1094_s4 = inlined_call_operand.vmem [shape: f32[1,32], index: 4, kind: input, shape index: {}]   ;;  %s1095_s5 = inlined_call_operand.vmem [shape: f32[32,16], index: 5, kind: input, shape index: {}]   ;;  %s1096_s6 = inlined_call_operand.vmem [shape: f32[1,16], index: 6, kind: input, shape index: {}]   ;;  %s1097_s7 = inlined_call_operand.hbm [shape: f32[16,16], index: 7, kind: output, shape index: {}]  }
   0x1   :  { %13 = vsyncpa [#allocation4], 0 }
   0x2   :  { %15 = vsyncpa [#allocation4 + $0x1], 0  ;;  %s916_s24 = smov 0   ;;  %s918_s25 = smov 0  }
   0x3   :  { %s920_s26 = smov 0   ;;  %s922_s27 = smov 0  }
   0x4 LB: > { %s937_s28 = sadd.s32 4294967295, %s867_s27   ;;  %s634_s29 = sadd.s32 4294967294, %s867_s27   ;;  %s867_s27 = sphi %s922_s27, %s1113_s27   ;;  %s863_s26 = sphi %s920_s26, %s1112_s26   ;;  %s859_s25 = sphi %s918_s25, %s1111_s25   ;;  %s855_s24 = sphi %s916_s24, %s1110_s24  }
   0x5   : > { %s941_s30 = sadd.s32 1, %s867_s27   ;;  %s180_s8 = sadd.s32 1, %s863_s26 }
   0x6   : > { %s177_s9 = ssub.s32 %s867_s27, %s941_s30  ;;  %p190_p0 = scmp.ne.s32.totalorder %s863_s26, %s859_s25 }
   0x7   : > { %p178_p1 = scmp.eq.s32.totalorder %s177_s9, 0  ;;  %p191_p2 = scmp.eq.s32.totalorder %s937_s28, 1 }
   0x8   : > { %p196_p3 = scmp.ne.s32.totalorder %s859_s25, %s855_s24  ;;  %p197_p4 = scmp.eq.s32.totalorder %s634_s29, 1 }
   0x9   : > { %s952_s10 = scalar_select %p178_p1, %s863_s26, %s180_s8  }
   0xa   : > { %p954_p5 = por %p191_p2, %p190_p0  ;;  %p958_p6 = por %p197_p4, %p196_p3 }
   0xb   : > { %p635_p7 = scmp.ge.s32.totalorder %s867_s27, 1  ;;  %p204_p8 = scmp.lt.s32.totalorder %s867_s27, 3 }
   0xc   : > { %s1101_s11 = scalar_select %p954_p5, 1, 0 }
   0xd   : > { %s1102_s12 = scalar_select %p958_p6, 1, 0 }
   0xe   : > { %p1098_p9 = scmp.eq.s32.totalorder %s937_s28, 0  ;;  %p965_p10 = pnand %p635_p7, %p204_p8 }
   0xf   : > { %s869_s14 = smov [#allocation2]   ;;  %s773_s19 = scalar_lea.hbm %s1093_s3, 512 }
  0x10   : > { %s1103_s13 = scalar_select %p965_p10, 1, 0 }
  0x11   : > { %s222_s15 = sshll.u32 %s869_s14, 4  ;;  %p724_p11 = pneg %p965_p10  ;;  %s223_s15 = int_to_ptr.vmem [resolvable:$true] %s222_s15 }
  0x12   : > { %p774_p13 = scmp.ne.s32.totalorder %s1093_s3, %s773_s19  ;;  %p780_p3 = scmp.lt.u32.totalorder %s773_s19, %s1093_s3 }
  0x13   : > { %p973_p12 = pnand %p1098_p9, %p724_p11 }
  0x15   : > { %p775_p0 = pneg %p973_p12 }
  0x17   : > { %p776_p1 = pnand %p775_p0, %p774_p13 }
  0x19   : > { %p777_p2 = pneg %p776_p1 }
  0x1b   : > { %p782_p4 = pnand %p780_p3, %p777_p2 }
  0x1d   : > { %785 = shalt.err (!%p782_p4)
}
  0x1e   : > { %s786_s29 = scalar_lea.vmem %s223_s15, 512  ;;  %p794_p9 = scmp.lt.s32.totalorder %s223_s15, %s223_s15 }
  0x1f   : > { %p787_p7 = scmp.ne.s32.totalorder %s223_s15, %s786_s29  ;;  %p795_p6 = scmp.lt.s32.totalorder %s786_s29, %s786_s29 }
  0x21   : > { %p789_p8 = pnand %p787_p7, %p775_p0  ;;  %p796_p5 = por %p795_p6, %p794_p9 }
  0x23   : > { %p790_p11 = pneg %p789_p8 }
  0x25   : > { %p797_p10 = pnand %p796_p5, %p790_p11 }
  0x27   : > { %800 = shalt.err (!%p797_p10)
}
  0x28   : > { %s870_s8 = smov 128   ;;  %s871_s9 = smov 8  }
  0x29   : > { %727 = dma.hbm_to_vmem [thread:$0]  (!%p973_p12), %s1093_s3, 512, %s223_s15, [#allocation3], %s870_s8, %s870_s8, %s871_s9  }
  0x2a   : > { %p1105_p13 = scmp.ne.s32.totalorder %s1103_s13, 0 }
  0x2b   : > { %p1106_p1 = scmp.eq.s32.totalorder (!%p1105_p13), %s937_s28, 0 }
  0x2c   : > { %254 = sbr.rel (%p1105_p13) target bundleno = 726 (0x2d6), region = 48 }
  0x33   : > { %846 = dma.done.wait (%p1106_p1), [#allocation3], 512   ;;  %p1107_p0 = pmov %p1106_p1 }
  0x34   : > { %p285_p5 = scmp.lt.s32.totalorder %s937_s28, 1  ;;  %v872_v0 = vmov 0.0|0.0   ;;  %vm873_vm0 = vmmov 0   ;;  %v874_v1 = vmov 0.0   ;;  %v290_v2 = vld [vmem:[%s1091_s1] sm:$0xff]  ;;  %v291_v3 = vld [vmem:[%s1091_s1 + $0x8] sm:$0xff] }
  0x35   : > { %848 = vsyncadd (%p1107_p0), [#allocation3], 4294966784  ;;  %700 = vmatprep.subr.bf16.mxu0 %v872_v0  ;;  %675 = vmatprep.mubr.msk.f32.mxu0 %vm873_vm0, %v874_v1  ;;  %v292_v4 = vld [vmem:[%s1091_s1 + $0x10] sm:$0xff]  ;;  %v701_v5 = vpack.c.bf16 %v291_v3, %v290_v2  ;;  %v293_v6 = vld [vmem:[%s1091_s1 + $0x18] sm:$0xff]  ;;  %vm301_vm1 = vcmask 261120   ;;  %s282_s9 = sand.u32 1, %s859_s25  }
  0x36   : > { %706 = vmatprep.subr.bf16.mxu1 %v872_v0  ;;  %686 = vmatprep.mubr.msk.f32.mxu1 %vm873_vm0, %v874_v1  ;;  %s286_s13 = scalar_select %p285_p5, %s937_s28, 1  ;;  %v704_v7 = vpack.c.bf16 %v293_v6, %v292_v4  ;;  %v377_v9 = vld [vmem:[#allocation2] sm:$0xff]  ;;  %v378_v10 = vld [vmem:[#allocation2 + $0x8] sm:$0xff]  ;;  %v379_v12 = vld [vmem:[#allocation2 + $0x10] sm:$0xff]  ;;  %vm547_vm2 = vcmask 130048  }
  0x37   : > { %702 = vmatpush3.bf16.msra.mxu0 %v701_v5  ;;  %v707_v11 = vpack.c.bf16 %v378_v10, %v377_v9  ;;  %v380_v13 = vld [vmem:[#allocation2 + $0x18] sm:$0xff]  ;;  %v642_v15 = vld [vmem:[%s1092_s2] ss:$0 sm:$0xff]  ;;  %v464_v22 = vld [vmem:[%s1095_s5 + $0x8] sm:$0xff]  ;;  %s649_s15 = sshll.u32 %s937_s28, 7  ;;  %s550_s22 = scalar_lea.sflag [#allocation4], %s282_s9 }
  0x38   : > { %s641_s29 = sshll.u32 %s286_s13, 3  ;;  %703 = vmatprep.subr.bf16.mxu0 %v872_v0  ;;  %v710_v14 = vpack.c.bf16 %v380_v13, %v379_v12  ;;  %v463_v21 = vld [vmem:[%s1095_s5] sm:$0xff]  ;;  %v465_v24 = vld [vmem:[%s1095_s5 + $0x10] sm:$0xff]  ;;  %v466_v25 = vld [vmem:[%s1095_s5 + $0x18] sm:$0xff]  ;;  %s1048_s21 = scalar_lea.hbm %s1097_s7, %s649_s15 }
  0x39   : > { %s288_s14 = scalar_lea.vmem %s1090_s0, %s641_s29  ;;  %708 = vmatpush3.bf16.msra.mxu1 %v707_v11  ;;  %v713_v23 = vpack.c.bf16 %v464_v22, %v463_v21  ;;  %v716_v26 = vpack.c.bf16 %v466_v25, %v465_v24  ;;  %v644_v27 = vld [vmem:[%s1094_s4] ss:$0 sm:$0xff]  ;;  %p1108_p9 = scmp.ne.s32.totalorder %s1101_s11, 0 }
  0x3a   : > { %v289_v8 = vld [vmem:[%s288_s14] sm:$0xff]  ;;  %709 = vmatprep.subr.bf16.mxu1 %v872_v0  ;;  %s640_s14 = sshll.u32 %s282_s9, 3  ;;  %s875_s28 = smov [#allocation5]  }
  0x3b   : > { %705 = vmatpush3.bf16.msra.mxu0 %v704_v7  ;;  %v646_v33 = vld [vmem:[%s1096_s6] ss:$0 sm:$0xff]  ;;  %s284_s16 = scalar_lea.vmem [#allocation5], %s640_s14  ;;  %s805_s29 = sshll.u32 %s875_s28, 4  ;;  %s806_s29 = int_to_ptr.vmem [resolvable:$false] %s805_s29 }
  0x3c   : > { %712 = vmatprep.subr.bf16.mxu0 %v872_v0  ;;  %s563_s18 = sshll.u32 %s284_s16, 4  ;;  %s807_s8 = scalar_lea.vmem %s806_s29, 256  ;;  %s1050_s18 = int_to_ptr.vmem [resolvable:$true] %s563_s18 }
  0x3d   : > { %711 = vmatpush3.bf16.msra.mxu1 %v710_v14  ;;  %s801_s23 = scalar_lea.vmem %s1050_s18, 128  ;;  %p808_p2 = scmp.lt.s32.totalorder %s1050_s18, %s806_s29 }
  0x3e   : > { %676 = vmatmul.mubr.msk.f32.vlgmr.msra.gmra.mrb[0].mxu0 %vm301_vm1, %v289_v8  ;;  %p802_p6 = scmp.ne.s32.totalorder %s1050_s18, %s801_s23  ;;  %p809_p3 = scmp.lt.s32.totalorder %s807_s8, %s801_s23 }
  0x3f   : > { %697 = vmatprep.mubr.msk.f32.mxu0 %vm873_vm0, %v874_v1  ;;  %714 = vmatpush3.bf16.msra.mxu0 %v713_v23 }
  0x40   : > { %715 = vmatprep.subr.bf16.mxu0 %v872_v0  ;;  %p803_p10 = pnand %p802_p6, %p1108_p9  ;;  %p810_p4 = por %p809_p3, %p808_p2 }
  0x42   : > { %p804_p12 = pneg %p803_p10 }
  0x43   : > { %717 = vmatpush3.bf16.msra.mxu0 %v716_v26 }
  0x44   : > { %p811_p7 = pnand %p810_p4, %p804_p12 }
 0x111   : > { %v371_v16 = vpop.f32.mrb[0].mxu0 }
 0x112   : > { %v372_v17 = vadd.f32 %v642_v15, %v371_v16  ;;  %v677_v18 = vpop.f32.mrb[1].mxu0 }
 0x114   : > { %v375_v19 = vmul.f32 0.01, %v372_v17 }
 0x116   : > { %v376_v20 = vmax.f32 %v372_v17, %v375_v19 }
 0x118   : > { %687 = vmatmul.mubr.msk.f32.vlgmr.msra.gmra.mrb[0].mxu1 %vm301_vm1, %v376_v20 }
 0x1eb   : > { %v457_v28 = vpop.f32.mrb[0].mxu1 }
 0x1ec   : > { %v458_v29 = vadd.f32 %v644_v27, %v457_v28  ;;  %v688_v30 = vpop.f32.mrb[1].mxu1 }
 0x1ee   : > { %v461_v31 = vmul.f32 0.01, %v458_v29 }
 0x1f0   : > { %v462_v32 = vmax.f32 %v458_v29, %v461_v31 }
 0x1f2   : > { %698 = vmatmul.mubr.msk.f32.vlgmr.msra.gmra.mrb[2].mxu0 %vm301_vm1, %v462_v32 }
 0x2c5   : > { %v543_v34 = vpop.f32.mrb[2].mxu0 }
 0x2c6   : > { %v544_v35 = vadd.f32 %v646_v33, %v543_v34  ;;  %v699_v36 = vpop.f32.mrb[3].mxu0 }
 0x2c8   : > { %548 = vst.msk [vmem:[%s284_s16] sm:$0xff] %vm547_vm2, %v544_v35 }
 0x2c9   : > { %814 = shalt.err (!%p811_p7)
}
 0x2ca   : > { %s815_s9 = scalar_lea.hbm %s1048_s21, 128  ;;  %s819_s13 = scalar_lea.hbm %s1097_s7, 256 }
 0x2cb   : > { %p816_p8 = scmp.ne.s32.totalorder %s1048_s21, %s815_s9  ;;  %p820_p1 = scmp.lt.u32.totalorder %s1048_s21, %s1097_s7 }
 0x2cc   : > { %p821_p0 = scmp.lt.u32.totalorder %s819_s13, %s815_s9  ;;  %p823_p6 = scmp.lt.u32.totalorder %s815_s9, %s1048_s21 }
 0x2cd   : > { %p817_p11 = pnand %p816_p8, %p1108_p9 }
 0x2ce   : > { %p822_p5 = por %p821_p0, %p820_p1 }
 0x2cf   : > { %p818_p13 = pneg %p817_p11 }
 0x2d0   : > { %p824_p10 = por %p823_p6, %p822_p5 }
 0x2d2   : > { %p825_p12 = pnand %p824_p10, %p818_p13 }
 0x2d4   : > { %828 = shalt.err (!%p825_p12)
}
 0x2d5   : > { %722 = dma.vmem_to_hbm [thread:$0]  (%p1108_p9), %s1050_s18, 128, %s1048_s21, %s550_s22  }
 0x2d6 PF: > { %p734_p2 = scmp.ge.s32.totalorder %s867_s27, 2  ;;  %s575_s19 = sand.u32 1, %s855_s24  }
 0x2d7   : > { %p1109_p3 = scmp.ne.s32.totalorder %s1102_s12, 0  ;;  %s576_s20 = scalar_lea.sflag [#allocation4], %s575_s19 }
 0x2d9   : > { %p729_p4 = pnand %p734_p2, %p1109_p3 }
 0x2db   : > { %850 = dma.done.wait (!%p729_p4), %s576_s20, 128  }
 0x2dc   : > { %852 = vsyncadd (!%p729_p4), %s576_s20, 4294967168  ;;  %p18_p7 = scmp.ge.s32.totalorder %s941_s30, 4   ;;  %s1110_s24 = smov %s859_s25 }
 0x2dd   : > { %s1111_s25 = smov %s863_s26  ;;  %s1112_s26 = smov %s952_s10 }
 0x2de   : > { %s1113_s27 = smov %s941_s30  ;;  %20 = sbr.rel (!%p18_p7) target bundleno = 4 (0x4), region = 88 }
 0x2e5   :  { %581 = vsyncpa [#allocation3], 1 }
 0x2e6   :  { %583 = vsyncpa [#allocation3 + $0x1], 1 }
 0x2e7   :  { %584 = vsyncpa [#allocation4], 1 }
 0x2e8   :  { %586 = vsyncpa [#allocation4 + $0x1], 1 }

</bundles_post_ra>
